<compile_context>
chip_gen: v7x
topology: tpu7x:2x2x1
jax: 0.10.0
libtpu: 0.0.40
codegen_flags: <defaults>
</compile_context>

<pallas_src>
import jax
import jax.numpy as jnp
from jax.experimental import pallas as pl
from jax.experimental.pallas import tpu as pltpu


def _density_ratio_kernel(z_ref, w_ref, c_ref, seg_ref, o_ref):
    """One batch block per grid step; parameter operands are constant-mapped.

    z_ref:   (B_BLK, L*Z)  latents, flattened (b, t, z) -> (b, t*Z + z)
    w_ref:   (C, L*Z)      trans[:L] rearranged: w[c, t*Z + z] = trans[t, z, c]
    c_ref:   (B_BLK, C)    contexts
    seg_ref: (L*Z, L)      0/1 segment selector (built once in the wrapper)
    o_ref:   (B_BLK, L)    density ratios (PyTorch output layout)
    """
    # u[b, t*Z + z] = sum_c c[b, c] * trans[t, z, c]
    # One lane-dense MXU pass (N = L*Z), native operand dtype, f32 accumulate.
    u = jnp.dot(c_ref[...], w_ref[...], preferred_element_type=jnp.float32)

    # r[b, t] = sum_z z[b, t, z] * u[b, t*Z + z]
    # VPU elementwise product + per-time-step segment sum as a selector matmul
    # (no in-kernel reshape/transpose; promotes to f32 if z is bf16).
    prod = z_ref[...] * u
    r = jnp.dot(prod, seg_ref[...], preferred_element_type=jnp.float32)

    o_ref[...] = jnp.exp(r).astype(o_ref.dtype)


def density_ratio_estimator(z, c, trans, *, b_blk=512):
    """Pallas forward pass of DenstiyRatioEstimator.

    Args:
      z:     (B, L, Z) latent representations.
      c:     (B, C)    context representations.
      trans: (P, Z, C) transition parameter, P >= L.
      b_blk: batch block size (rounded down to a multiple of 8 when B > b_blk).

    Returns:
      r: (B, L) density ratios (exp of bilinear scores), f32.
    """
    batch, seq_len, z_dim = z.shape
    predictive_steps, z_dim_w, c_dim = trans.shape
    if seq_len > predictive_steps:
        raise ValueError(
            f"Given sequence length ({seq_len}) must be equal or smaller than "
            f"predictive steps ({predictive_steps})."
        )
    assert z_dim_w == z_dim, "trans z_dim must match z"
    assert c.shape == (batch, c_dim), "c must be (batch, c_dim)"

    lz = seq_len * z_dim

    # Layout plumbing only (no compute hoisted out of the kernel):
    #   z: contiguous flatten (free, no HBM transpose/copy of z).
    #   trans[:L]: tiny parameter rearranged once to (C, L*Z) so the kernel's
    #   first matmul is lane-dense; w2[c, t*Z + z] == trans[t, z, c], matching
    #   z_flat's (t*Z + z) flattening.
    z_flat = z.reshape(batch, lz)
    w2 = jnp.transpose(trans[:seq_len], (2, 0, 1)).reshape(c_dim, lz)
    assert w2.shape == (c_dim, lz)

    # Constant 0/1 block selector (L*Z, L): seg[t*Z + j, t] = 1. Built once
    # here (compile-time constant) instead of per grid step inside the kernel.
    seg = (
        jnp.arange(lz, dtype=jnp.int32)[:, None] // z_dim
        == jnp.arange(seq_len, dtype=jnp.int32)[None, :]
    ).astype(jnp.float32)

    # Batch blocking: one full block for small batches, else multiple-of-8
    # blocks so BlockSpec auto-pipelining double-buffers the z/c/out DMA.
    if batch <= b_blk:
        blk = batch
    else:
        blk = max(8, b_blk - (b_blk % 8))
    grid = (pl.cdiv(batch, blk),)

    # exp() computed/stored at >= f32 so low-precision z cannot overflow out.
    out_dtype = jnp.result_type(z.dtype, jnp.float32)

    out = pl.pallas_call(
        _density_ratio_kernel,
        out_shape=jax.ShapeDtypeStruct((batch, seq_len), out_dtype),
        grid=grid,
        in_specs=[
            pl.BlockSpec((blk, lz), lambda i: (i, 0)),        # z (streamed)
            pl.BlockSpec((c_dim, lz), lambda i: (0, 0)),      # w2 (constant)
            pl.BlockSpec((blk, c_dim), lambda i: (i, 0)),     # c (streamed)
            pl.BlockSpec((lz, seq_len), lambda i: (0, 0)),    # seg (constant)
        ],
        out_specs=pl.BlockSpec((blk, seq_len), lambda i: (i, 0)),
        compiler_params=pltpu.CompilerParams(
            dimension_semantics=("parallel",),
        ),
    )(z_flat, w2, c, seg)

    return out  # already (B, L) — no output transpose needed


def _reference(z, c, trans):
    """Pure-JAX reference mirroring the PyTorch loop (full-precision einsums)."""
    seq_len = z.shape[1]
    m = jnp.einsum("blz,lzc->blc", z, trans[:seq_len],
                   precision=jax.lax.Precision.HIGHEST)
    r = jnp.einsum("blc,bc->bl", m, c,
                   precision=jax.lax.Precision.HIGHEST)
    return jnp.exp(r)


def _check(z, c, trans):
    r = jax.block_until_ready(density_ratio_estimator(z, c, trans))
    r_ref = _reference(z, c, trans)
    assert r.shape == r_ref.shape
    # Compare in log space (scores) to avoid exp() amplifying f32
    # summation-order rounding, plus a relaxed direct check.
    assert jnp.allclose(jnp.log(r), jnp.log(r_ref), atol=5e-3, rtol=1e-5), \
        "log-space mismatch vs reference"
    assert jnp.allclose(r, r_ref, rtol=5e-3, atol=1e-6), \
        "mismatch vs reference"
    return r


if __name__ == "__main__":
    # Small shapes consistent with the module's forward.
    batch, seq_len, z_dim, c_dim, predictive_steps = 2, 6, 32, 16, 8

    key = jax.random.PRNGKey(0)
    k_z, k_c, k_w, k_z2, k_c2 = jax.random.split(key, 5)
    z = jax.random.normal(k_z, (batch, seq_len, z_dim), dtype=jnp.float32)
    c = jax.random.normal(k_c, (batch, c_dim), dtype=jnp.float32)
    # Deterministic stand-in for nn.Parameter(torch.randn(P, Z, C)).
    trans = jax.random.normal(k_w, (predictive_steps, z_dim, c_dim),
                              dtype=jnp.float32)

    r = _check(z, c, trans)
    assert r.shape == (batch, seq_len)

    # Exercise the multi-block grid path (2 full 512-row blocks + a partial
    # block).  Inputs scaled down so exp() of the max score stays finite.
    big_batch = 1040
    z_big = 0.25 * jax.random.normal(
        k_z2, (big_batch, seq_len, z_dim), dtype=jnp.float32)
    c_big = 0.25 * jax.random.normal(
        k_c2, (big_batch, c_dim), dtype=jnp.float32)
    r_big = _check(z_big, c_big, trans)
    assert r_big.shape == (big_batch, seq_len)

    print("KERNEL_OK")
</pallas_src>

<mosaic_0001>
module attributes {stable_mosaic.version = 11 : i64} {
  func.func @_density_ratio_kernel(%arg0: i32, %arg1: memref<2x192xf32, #tpu.memory_space<vmem>>, %arg2: memref<16x192xf32, #tpu.memory_space<vmem>>, %arg3: memref<2x16xf32, #tpu.memory_space<vmem>>, %arg4: memref<192x6xf32, #tpu.memory_space<vmem>>, %arg5: memref<2x6xf32, #tpu.memory_space<vmem>>) attributes {dimension_semantics = [#tpu.dimension_semantics<parallel>], iteration_bounds = array<i64: 1>, scalar_prefetch = 0 : i64, scratch_operands = 0 : i64, tpu.core_type = #tpu.core_type<tc>, window_params = [{transform_indices = @transform_0, window_bounds = array<i64: 2, 192>}, {pipeline_mode = #tpu.pipeline_mode<synchronous>, transform_indices = @transform_1, window_bounds = array<i64: 16, 192>}, {transform_indices = @transform_2, window_bounds = array<i64: 2, 16>}, {pipeline_mode = #tpu.pipeline_mode<synchronous>, transform_indices = @transform_3, window_bounds = array<i64: 192, 6>}, {transform_indices = @transform_4, window_bounds = array<i64: 2, 6>}]} {
    %c0 = arith.constant 0 : index
    %c0_0 = arith.constant 0 : index
    %0 = vector.load %arg3[%c0, %c0_0] : memref<2x16xf32, #tpu.memory_space<vmem>>, vector<2x16xf32>
    %c0_1 = arith.constant 0 : index
    %c0_2 = arith.constant 0 : index
    %1 = vector.load %arg2[%c0_1, %c0_2] : memref<16x192xf32, #tpu.memory_space<vmem>>, vector<16x192xf32>
    %cst = arith.constant dense<0.000000e+00> : vector<2x192xf32>
    %2 = tpu.matmul %0, %1, %cst {dimension_numbers = #tpu.dot_dimension_numbers<[1], [0], [0], [1], [0, 0, 1, 1], [], []>} : vector<2x16xf32>, vector<16x192xf32>, vector<2x192xf32> -> vector<2x192xf32>
    %c0_3 = arith.constant 0 : index
    %c0_4 = arith.constant 0 : index
    %3 = vector.load %arg1[%c0_3, %c0_4] : memref<2x192xf32, #tpu.memory_space<vmem>>, vector<2x192xf32>
    %4 = arith.mulf %3, %2 : vector<2x192xf32>
    %c0_5 = arith.constant 0 : index
    %c0_6 = arith.constant 0 : index
    %5 = vector.load %arg4[%c0_5, %c0_6] : memref<192x6xf32, #tpu.memory_space<vmem>>, vector<192x6xf32>
    %cst_7 = arith.constant dense<0.000000e+00> : vector<2x6xf32>
    %6 = tpu.matmul %4, %5, %cst_7 {dimension_numbers = #tpu.dot_dimension_numbers<[1], [0], [0], [1], [0, 0, 1, 1], [], []>} : vector<2x192xf32>, vector<192x6xf32>, vector<2x6xf32> -> vector<2x6xf32>
    %7 = math.exp %6 : vector<2x6xf32>
    %c0_8 = arith.constant 0 : index
    %c0_9 = arith.constant 0 : index
    %8 = vector.load %arg5[%c0_8, %c0_9] : memref<2x6xf32, #tpu.memory_space<vmem>>, vector<2x6xf32>
    tpu.vector_store %arg5[%c0_8, %c0_9], %7 {strides = array<i32>} : memref<2x6xf32, #tpu.memory_space<vmem>>, vector<2x6xf32>,
    return
  }
  func.func @transform_0(%arg0: i32) -> (i32, i32) {
    %c0_i32 = arith.constant 0 : i32
    %c0_i32_0 = arith.constant 0 : i32
    return %arg0, %c0_i32 : i32, i32
  }
  func.func @transform_1(%arg0: i32) -> (i32, i32) {
    %c0_i32 = arith.constant 0 : i32
    %c0_i32_0 = arith.constant 0 : i32
    %c0_i32_1 = arith.constant 0 : i32
    return %c0_i32, %c0_i32_0 : i32, i32
  }
  func.func @transform_2(%arg0: i32) -> (i32, i32) {
    %c0_i32 = arith.constant 0 : i32
    %c0_i32_0 = arith.constant 0 : i32
    return %arg0, %c0_i32 : i32, i32
  }
  func.func @transform_3(%arg0: i32) -> (i32, i32) {
    %c0_i32 = arith.constant 0 : i32
    %c0_i32_0 = arith.constant 0 : i32
    %c0_i32_1 = arith.constant 0 : i32
    return %c0_i32, %c0_i32_0 : i32, i32
  }
  func.func @transform_4(%arg0: i32) -> (i32, i32) {
    %c0_i32 = arith.constant 0 : i32
    %c0_i32_0 = arith.constant 0 : i32
    return %arg0, %c0_i32 : i32, i32
  }
}

</mosaic_0001>

<bundles_post_ra>
// kernel: tpu_custom_call.1
= control target key start
LH: loop header
LB: loop body
LE: loop exit
PB: predicated region body
PF: predicated region fallthrough
CT: control target
= control target key end

     0   :  { %v308_v5 = vmov 0.0   ;;  %v309_v6 = vmov 0.0|0.0   ;;  %vm23_vm0 = vcmask 130048   ;;  %s451_s0 = inlined_call_operand.vmem [shape: f32[2,192], index: 0, kind: input, shape index: {}]   ;;  %s452_s1 = inlined_call_operand.vmem [shape: f32[16,192], index: 1, kind: input, shape index: {}]   ;;  %s453_s2 = inlined_call_operand.vmem [shape: f32[2,16], index: 2, kind: input, shape index: {}]   ;;  %s454_s3 = inlined_call_operand.vmem [shape: f32[192,6], index: 3, kind: input, shape index: {}]   ;;  %s455_s4 = inlined_call_operand.hbm [shape: f32[2,6], index: 4, kind: output, shape index: {}]  }
   0x1   :  { %v20_v0 = vld [vmem:[%s452_s1 + $0x8] sm:$0xff]  ;;  %v22_v1 = vld [vmem:[%s452_s1 + $0x18] sm:$0xff]  ;;  %v19_v2 = vld [vmem:[%s452_s1] sm:$0xff]  ;;  %91 = vmatprep.mubr.f32.mxu0 %v308_v5  ;;  %242 = vmatprep.subr.bf16.mxu1 %v309_v6 }
   0x2   :  { %v238_v3 = vpack.c.bf16 %v22_v1, %v20_v0  ;;  %v21_v4 = vld [vmem:[%s452_s1 + $0x10] sm:$0xff]  ;;  %v111_v7 = vld [vmem:[%s454_s3] sm:$0xff]  ;;  %v112_v9 = vld [vmem:[%s454_s3 + $0x8] sm:$0xff] }
   0x3   :  { %v240_v8 = vpack.c.bf16 %v21_v4, %v19_v2  ;;  %v113_v10 = vld [vmem:[%s454_s3 + $0x10] sm:$0xff]  ;;  %v114_v11 = vld [vmem:[%s454_s3 + $0x18] sm:$0xff]  ;;  %v243_v12 = vpack.c.bf16 %v112_v9, %v111_v7  ;;  %v18_v13 = vld [vmem:[%s453_s2] sm:$0x3] }
   0x4   :  { %239 = vmatprep.subr.bf16.mxu0 %v238_v3  ;;  %v246_v14 = vpack.c.bf16 %v114_v11, %v113_v10  ;;  %v115_v15 = vld [vmem:[%s454_s3 + $0x20] sm:$0xff]  ;;  %v116_v16 = vld [vmem:[%s454_s3 + $0x28] sm:$0xff] }
   0x5   :  { %241 = vmatpush1.bf16.msra.mxu0 %v240_v8  ;;  %244 = vmatpush1.bf16.msra.mxu1 %v243_v12 }
   0x6   :  { %245 = vmatprep.subr.bf16.mxu1 %v309_v6 }
   0x8   :  { %236 = vmatmul.mubr.msk.f32.vlgmr.msra.gmra.mrb[0].mxu0 %vm23_vm0, %v18_v13 }
   0x9   :  { %9 = vsyncpa [#allocation3], 0  ;;  %247 = vmatpush1.bf16.msra.mxu1 %v246_v14  ;;  %v249_v17 = vpack.c.bf16 %v116_v16, %v115_v15  ;;  %v117_v18 = vld [vmem:[%s454_s3 + $0x30] sm:$0xff]  ;;  %v118_v19 = vld [vmem:[%s454_s3 + $0x38] sm:$0xff]  ;;  %v310_v45 = vmov 1983009808   ;;  %v105_v47 = vlaneseq }
   0xa   :  { %248 = vmatprep.subr.bf16.mxu1 %v309_v6  ;;  %v252_v20 = vpack.c.bf16 %v118_v19, %v117_v18  ;;  %v119_v21 = vld [vmem:[%s454_s3 + $0x40] sm:$0xff]  ;;  %v120_v22 = vld [vmem:[%s454_s3 + $0x48] sm:$0xff]  ;;  %v121_v24 = vld [vmem:[%s454_s3 + $0x50] sm:$0xff]  ;;  %v103_v46 = vunpack.c.l.s4 %v310_v45  ;;  %vm145_vm1 = vcmask 523264   ;;  %vm220_vm2 = vcmask 41984  }
   0xb   :  { %v255_v23 = vpack.c.bf16 %v120_v22, %v119_v21  ;;  %v122_v25 = vld [vmem:[%s454_s3 + $0x58] sm:$0xff]  ;;  %v123_v27 = vld [vmem:[%s454_s3 + $0x60] sm:$0xff]  ;;  %v124_v28 = vld [vmem:[%s454_s3 + $0x68] sm:$0xff]  ;;  %v106_v49 = vshrl.u32 %v105_v47, 7 }
   0xc   :  { %v258_v26 = vpack.c.bf16 %v122_v25, %v121_v24  ;;  %v261_v29 = vpack.c.bf16 %v124_v28, %v123_v27  ;;  %v125_v30 = vld [vmem:[%s454_s3 + $0x70] sm:$0xff]  ;;  %v126_v31 = vld [vmem:[%s454_s3 + $0x78] sm:$0xff]  ;;  %v127_v33 = vld [vmem:[%s454_s3 + $0x80] sm:$0xff]  ;;  %v104_v48 = vunpack.c.0.s8 %v103_v46 }
   0xd   :  { %250 = vmatpush1.bf16.msra.mxu1 %v249_v17  ;;  %v264_v32 = vpack.c.bf16 %v126_v31, %v125_v30  ;;  %v128_v34 = vld [vmem:[%s454_s3 + $0x88] sm:$0xff]  ;;  %v129_v36 = vld [vmem:[%s454_s3 + $0x90] sm:$0xff]  ;;  %v130_v37 = vld [vmem:[%s454_s3 + $0x98] sm:$0xff] }
   0xe   :  { %251 = vmatprep.subr.bf16.mxu1 %v309_v6  ;;  %v267_v35 = vpack.c.bf16 %v128_v34, %v127_v33  ;;  %v270_v38 = vpack.c.bf16 %v130_v37, %v129_v36  ;;  %v131_v39 = vld [vmem:[%s454_s3 + $0xa0] sm:$0xff]  ;;  %v132_v40 = vld [vmem:[%s454_s3 + $0xa8] sm:$0xff]  ;;  %v133_v42 = vld [vmem:[%s454_s3 + $0xb0] sm:$0xff]  ;;  %v107_v51 = vsub.s32 %v104_v48, %v106_v49 }
   0xf   :  { %v273_v41 = vpack.c.bf16 %v132_v40, %v131_v39  ;;  %v134_v43 = vld [vmem:[%s454_s3 + $0xb8] sm:$0xff]  ;;  %v98_v54 = vld [vmem:[%s451_s0] sm:$0xf]  ;;  %s311_s3 = smov [#allocation2]  }
  0x10   :  { %v276_v44 = vpack.c.bf16 %v134_v43, %v133_v42  ;;  %s228_s19 = sshll.u32 %s311_s3, 4  ;;  %s229_s19 = int_to_ptr.vmem [resolvable:$true] %s228_s19 }
  0x11   :  { %253 = vmatpush1.bf16.msra.mxu1 %v252_v20  ;;  %s284_s20 = scalar_lea.vmem %s229_s19, 32  ;;  %p289_p1 = scmp.lt.s32.totalorder %s229_s19, %s229_s19 }
  0x12   :  { %254 = vmatprep.subr.bf16.mxu1 %v309_v6  ;;  %p285_p0 = scmp.ne.s32.totalorder %s229_s19, %s284_s20  ;;  %p290_p2 = scmp.lt.s32.totalorder %s284_s20, %s284_s20 }
  0x14   :  { %p291_p3 = por %p290_p2, %p289_p1 }
  0x15   :  { %256 = vmatpush1.bf16.msra.mxu1 %v255_v23 }
  0x16   :  { %257 = vmatprep.subr.bf16.mxu1 %v309_v6  ;;  %p292_p4 = pnand %p291_p3, %p285_p0 }
  0x19   :  { %259 = vmatpush1.bf16.msra.mxu1 %v258_v26 }
  0x1a   :  { %260 = vmatprep.subr.bf16.mxu1 %v309_v6 }
  0x1d   :  { %262 = vmatpush1.bf16.msra.mxu1 %v261_v29 }
  0x1e   :  { %263 = vmatprep.subr.bf16.mxu1 %v309_v6 }
  0x21   :  { %265 = vmatpush1.bf16.msra.mxu1 %v264_v32 }
  0x22   :  { %266 = vmatprep.subr.bf16.mxu1 %v309_v6 }
  0x25   :  { %268 = vmatpush1.bf16.msra.mxu1 %v267_v35 }
  0x26   :  { %269 = vmatprep.subr.bf16.mxu1 %v309_v6 }
  0x29   :  { %271 = vmatpush1.bf16.msra.mxu1 %v270_v38 }
  0x2a   :  { %272 = vmatprep.subr.bf16.mxu1 %v309_v6 }
  0x2d   :  { %274 = vmatpush1.bf16.msra.mxu1 %v273_v41 }
  0x2e   :  { %275 = vmatprep.subr.bf16.mxu1 %v309_v6 }
  0x31   :  { %277 = vmatpush1.bf16.msra.mxu1 %v276_v44 }
  0xdb   :  { %v93_v50 = vpop.f32.mrb[0].mxu0 }
  0xdc   :  { %v95_v52 = vpop.f32.mrb[1].mxu0 }
  0xdd   :  { %v101_v53 = vcombine.low %v93_v50, %v95_v52 }
  0xdf   :  { %v108_v55 = vrot.slane %v101_v53, %v107_v51 }
  0xe1   :  { %v110_v56 = vmul.f32 %v108_v55, %v98_v54 }
  0xe3   :  { %v142_v57 = vrot.slane %v110_v56, %v107_v51 }
  0xe5   :  { %v143_v58 = vcombine.high %v142_v57, %v142_v57 }
  0xe7   :  { %237 = vmatprep.mubr.msk.f32.mxu1 %vm145_vm1, %v143_v58 }
  0xe8   :  { %213 = vmatmul.mubr.f32.vlgmr.msra.gmra.mrb[0].mxu1 %v142_v57 }
 0x1bb   :  { %v214_v59 = vpop.f32.mrb[0].mxu1 }
 0x1bc   :  { %v218_v60 = vmul.f32 1.442695, %v214_v59  ;;  %v216_v61 = vpop.f32.mrb[1].mxu1 }
 0x1be   :  { %282 = vpow2.f32 %v218_v60 }
 0x1c8   :  { %v283_v62 = vpop.eup %282 }
 0x1c9   :  { %221 = vst.msk [vmem:[#allocation2] sm:$0x3] %vm220_vm2, %v283_v62 }
 0x1ca   :  { %295 = shalt.err (!%p292_p4)
}
 0x1cb   :  { %s296_s22 = scalar_lea.hbm %s455_s4, 32 }
 0x1cc   :  { %p297_p5 = scmp.ne.s32.totalorder %s455_s4, %s296_s22  ;;  %p300_p6 = scmp.lt.u32.totalorder %s296_s22, %s455_s4 }
 0x1ce   :  { %p302_p7 = pnand %p300_p6, %p297_p5 }
 0x1d0   :  { %305 = shalt.err (!%p302_p7)
}
 0x1d1   :  { %231 = dma.vmem_to_hbm [thread:$0]  %s229_s19, 32, %s455_s4, [#allocation3]  }
 0x1d2   :  { %306 = dma.done.wait [#allocation3], 32  }
 0x1d3   :  { %307 = vsyncadd [#allocation3], 4294967264 }
 0x1d4   :  { %235 = vsyncpa [#allocation3], 1 }

</bundles_post_ra>
